<compile_context>
chip_gen: v5e
topology: v5e:2x2
jax: 0.10.0
libtpu: 0.0.40
codegen_flags: <defaults>
</compile_context>

<pallas_src>
import functools

import jax
import jax.numpy as jnp
from jax import lax
from jax.experimental import pallas as pl
from jax.experimental.pallas import tpu as pltpu


def _chgap_kernel(params_ref, x_ref, out_ref, *, matmul_dtype):
    # params_ref: SMEM [4] = [gamma, w0, w1, w2]
    # x_ref / out_ref: VMEM [bp, C, HW]
    bp, C, HW = x_ref.shape
    x = x_ref[...].astype(jnp.float32)                              # [bp, C, HW]

    gamma = params_ref[0]
    w0 = params_ref[1]
    w1 = params_ref[2]
    w2 = params_ref[3]

    xm = x if matmul_dtype is None else x.astype(matmul_dtype)

    # ---- CAM channel attention ----
    # energy[b, c, d] = sum_s x[b, c, s] * x[b, d, s]  (contract lanes; no explicit x^T)
    energy = lax.dot_general(
        xm, xm,
        dimension_numbers=(((2,), (2,)), ((0,), (0,))),
        preferred_element_type=jnp.float32)                         # [bp, C, C]

    # softmax(rowmax(E) - E), stabilized, == exp(rowmin(E) - E) / sum(...)
    rowmin = jnp.min(energy, axis=-1, keepdims=True)                # [bp, C, 1]
    p = jnp.exp(rowmin - energy)                                    # [bp, C, C]
    attn = p * pl.reciprocal(jnp.sum(p, axis=-1, keepdims=True), approx=True)

    attn_m = attn if matmul_dtype is None else attn.astype(matmul_dtype)
    ca = lax.dot_general(
        attn_m, xm,
        dimension_numbers=(((2,), (1,)), ((0,), (0,))),
        preferred_element_type=jnp.float32)                         # [bp, C, HW]
    ca = gamma * ca + x                                             # keep f32 elementwise

    # ---- global average pool over spatial ----
    gap = jnp.mean(ca, axis=-1, keepdims=True)                      # [bp, C, 1]

    # ---- ECA conv1d(k=3, pad=1, no bias) over channels, matrix-free ----
    # eca[i] = w0*gap[i-1] + w1*gap[i] + w2*gap[i+1]  (zero padded; padding handled by
    # the index masks below).  Implemented with iota masks + broadcast-multiply +
    # small reductions on the otherwise-idle VPU/XLU slots.
    j = lax.broadcasted_iota(jnp.int32, (bp, C, C), 1)   # input-channel index (sublane)
    i = lax.broadcasted_iota(jnp.int32, (bp, C, C), 2)   # output-channel index (lane)
    band_t = (jnp.where(i == j + 1, w0, 0.0)
              + jnp.where(i == j, w1, 0.0)
              + jnp.where(i == j - 1, w2, 0.0))          # band_t[j, i] = band[i, j]
    eca_row = jnp.sum(band_t * gap, axis=1, keepdims=True)          # [bp, 1, C]
    # move eca back onto the channel (sublane) axis via a masked reduction
    # (cheap alternative to an explicit transpose op for a length-C vector).
    eca = jnp.sum(jnp.where(i == j, eca_row, 0.0), axis=2, keepdims=True)  # [bp, C, 1]
    sig = jax.nn.sigmoid(eca)                                       # [bp, C, 1]

    out_ref[...] = (ca * sig).astype(out_ref.dtype)                 # [bp, C, HW]


@functools.partial(jax.jit, static_argnames=("matmul_dtype", "batch_block"))
def chgap_pallas(x, gamma, conv_w, *, matmul_dtype=None, batch_block=None):
    """x: [B, C, H, W]; gamma: scalar; conv_w: [1, 1, 3] (PyTorch Conv1d weight).

    matmul_dtype: optional dtype (e.g. jnp.bfloat16) for the two big MXU matmuls
        (f32 accumulation; all elementwise math stays f32).  Recommended on v6e/v7x.
    batch_block: batch elements packed per grid step.  Default fills 8 sublanes when
        C is tiny; pass 1 to keep >= 2 parallel grid steps for 2-TC chips when B is small.
    """
    B, C, H, W = x.shape
    HW = H * W
    x_flat = x.reshape(B, C, HW)

    if batch_block is None:
        bp = 1 if C >= 8 else max(1, min(B, 8 // max(C, 1)))
    else:
        bp = max(1, min(B, batch_block))
    while B % bp:
        bp -= 1

    # gamma + the 3 ECA conv taps travel as SMEM scalars (no [C, C] banded matrix in HBM).
    params = jnp.concatenate([
        jnp.asarray(gamma, jnp.float32).reshape(1),
        conv_w.reshape(3).astype(jnp.float32),
    ])

    itemsize = jnp.dtype(x.dtype).itemsize
    cost = pl.CostEstimate(
        flops=int(4 * B * C * C * HW),                 # two C x C x HW matmuls per batch
        transcendentals=int(B * (C * C + 2 * C)),      # exp + sigmoid + reciprocal
        bytes_accessed=int(2 * B * C * HW * itemsize + params.size * 4),
    )

    kernel = functools.partial(_chgap_kernel, matmul_dtype=matmul_dtype)
    out_flat = pl.pallas_call(
        kernel,
        out_shape=jax.ShapeDtypeStruct((B, C, HW), x.dtype),
        grid=(B // bp,),
        in_specs=[
            pl.BlockSpec(memory_space=pltpu.MemorySpace.SMEM),      # [gamma, w0, w1, w2]
            pl.BlockSpec((bp, C, HW), lambda b: (b, 0, 0)),         # x batch tile
        ],
        out_specs=pl.BlockSpec((bp, C, HW), lambda b: (b, 0, 0)),
        compiler_params=pltpu.CompilerParams(
            dimension_semantics=("parallel",)),
        cost_estimate=cost,
    )(params, x_flat)

    return out_flat.reshape(B, C, H, W)


def chgap_reference(x, gamma, conv_w):
    """Pure-JAX reference matching the PyTorch forward."""
    B, C, H, W = x.shape
    proj = x.reshape(B, C, H * W)
    energy = jnp.einsum("bcm,bdm->bcd", proj, proj)
    energy_new = jnp.max(energy, axis=-1, keepdims=True) - energy
    attn = jax.nn.softmax(energy_new, axis=-1)
    out = jnp.einsum("bcd,bdm->bcm", attn, proj)
    ca = (gamma * out + proj).reshape(B, C, H, W)
    gap = jnp.mean(ca, axis=(2, 3))                                 # [B, C]
    padded = jnp.pad(gap, ((0, 0), (1, 1)))
    w = conv_w.reshape(3)
    eca = w[0] * padded[:, 0:C] + w[1] * padded[:, 1:C + 1] + w[2] * padded[:, 2:C + 2]
    sig = jax.nn.sigmoid(eca)
    return ca * sig[:, :, None, None]


if __name__ == "__main__":
    key = jax.random.PRNGKey(0)
    k_x, k_g, k_w = jax.random.split(key, 3)

    B, C, H, W = 2, 4, 16, 16
    x = jax.random.normal(k_x, (B, C, H, W), dtype=jnp.float32)

    # Deterministic parameter init (module __init__ shapes):
    #   CAM gamma: scalar (PyTorch inits to 0; use a nonzero deterministic value so the
    #   attention path is actually exercised).
    gamma = jax.random.normal(k_g, ()) * 0.1
    #   ECA Conv1d(1, 1, kernel_size=3, bias=False) weight: [1, 1, 3]
    conv_w = jax.random.uniform(k_w, (1, 1, 3), minval=-0.5, maxval=0.5, dtype=jnp.float32)

    ref = chgap_reference(x, gamma, conv_w)

    # f32 matmuls, batch packing enabled (C=4 -> 2 batch elements per grid step).
    out = chgap_pallas(x, gamma, conv_w)
    out = jax.block_until_ready(out)
    assert out.shape == (B, C, H, W)
    # tolerance accounts for the approx (EUP) reciprocal in the softmax denominator
    err = float(jnp.max(jnp.abs(out - ref)))
    assert err < 5e-3, f"f32 mismatch vs reference (max abs err = {err})"

    print("KERNEL_OK")
</pallas_src>

<mosaic_0001>
module attributes {stable_mosaic.version = 11 : i64} {
  func.func @_chgap_kernel(%arg0: i32, %arg1: memref<4xf32, #tpu.memory_space<smem>>, %arg2: memref<2x4x256xf32, #tpu.memory_space<vmem>>, %arg3: memref<2x4x256xf32, #tpu.memory_space<vmem>>) attributes {dimension_semantics = [#tpu.dimension_semantics<parallel>], iteration_bounds = array<i64: 1>, scalar_prefetch = 0 : i64, scratch_operands = 0 : i64, tpu.core_type = #tpu.core_type<tc>, window_params = [{transform_indices = @transform_0, window_bounds = array<i64: 4>}, {transform_indices = @transform_1, window_bounds = array<i64: 2, 4, 256>}, {transform_indices = @transform_2, window_bounds = array<i64: 2, 4, 256>}]} {
    %c0 = arith.constant 0 : index
    %c0_0 = arith.constant 0 : index
    %c0_1 = arith.constant 0 : index
    %0 = vector.load %arg2[%c0, %c0_0, %c0_1] : memref<2x4x256xf32, #tpu.memory_space<vmem>>, vector<2x4x256xf32>
    %c0_2 = arith.constant 0 : index
    %1 = memref.load %arg1[%c0_2] : memref<4xf32, #tpu.memory_space<smem>>
    %c1 = arith.constant 1 : index
    %2 = memref.load %arg1[%c1] : memref<4xf32, #tpu.memory_space<smem>>
    %c2 = arith.constant 2 : index
    %3 = memref.load %arg1[%c2] : memref<4xf32, #tpu.memory_space<smem>>
    %c3 = arith.constant 3 : index
    %4 = memref.load %arg1[%c3] : memref<4xf32, #tpu.memory_space<smem>>
    %cst = arith.constant dense<0.000000e+00> : vector<2x4x4xf32>
    %5 = tpu.matmul %0, %0, %cst {dimension_numbers = #tpu.dot_dimension_numbers<[2], [2], [1], [1], [0, 0, 0, 1, 1, 1], [0], [0]>} : vector<2x4x256xf32>, vector<2x4x256xf32>, vector<2x4x4xf32> -> vector<2x4x4xf32>
    %cst_3 = arith.constant dense<0x7F800000> : vector<2x4xf32>
    %6 = vector.multi_reduction <minimumf>, %5, %cst_3 [2] : vector<2x4x4xf32> to vector<2x4xf32>
    %7 = vector.shape_cast %6 : vector<2x4xf32> to vector<2x4x1xf32>
    %8 = vector.broadcast %7 : vector<2x4x1xf32> to vector<2x4x4xf32>
    %9 = arith.subf %8, %5 : vector<2x4x4xf32>
    %10 = math.exp %9 : vector<2x4x4xf32>
    %cst_4 = arith.constant dense<0.000000e+00> : vector<2x4xf32>
    %11 = vector.multi_reduction <add>, %10, %cst_4 [2] : vector<2x4x4xf32> to vector<2x4xf32>
    %12 = vector.shape_cast %11 : vector<2x4xf32> to vector<2x4x1xf32>
    %13 = tpu.reciprocal %12 {approx = true} : vector<2x4x1xf32> -> vector<2x4x1xf32>
    %14 = vector.broadcast %13 : vector<2x4x1xf32> to vector<2x4x4xf32>
    %15 = arith.mulf %10, %14 : vector<2x4x4xf32>
    %cst_5 = arith.constant dense<0.000000e+00> : vector<2x4x256xf32>
    %16 = tpu.matmul %15, %0, %cst_5 {dimension_numbers = #tpu.dot_dimension_numbers<[2], [1], [1], [2], [0, 0, 0, 1, 1, 2], [0], [0]>} : vector<2x4x4xf32>, vector<2x4x256xf32>, vector<2x4x256xf32> -> vector<2x4x256xf32>
    %17 = vector.broadcast %1 : f32 to vector<2x4x256xf32>
    %18 = arith.mulf %17, %16 : vector<2x4x256xf32>
    %19 = arith.addf %18, %0 : vector<2x4x256xf32>
    %cst_6 = arith.constant dense<0.000000e+00> : vector<2x4xf32>
    %20 = vector.multi_reduction <add>, %19, %cst_6 [2] : vector<2x4x256xf32> to vector<2x4xf32>
    %21 = vector.shape_cast %20 : vector<2x4xf32> to vector<2x4x1xf32>
    %cst_7 = arith.constant 2.560000e+02 : f32
    %22 = vector.broadcast %cst_7 : f32 to vector<2x4x1xf32>
    %23 = arith.divf %21, %22 : vector<2x4x1xf32>
    %24 = tpu.iota {dimensions = array<i32: 1>} : vector<2x4x4xi32>
    %25 = tpu.iota {dimensions = array<i32: 2>} : vector<2x4x4xi32>
    %c1_i32 = arith.constant 1 : i32
    %26 = vector.broadcast %c1_i32 : i32 to vector<2x4x4xi32>
    %27 = arith.addi %24, %26 : vector<2x4x4xi32>
    %28 = arith.cmpi eq, %25, %27 : vector<2x4x4xi32>
    %cst_8 = arith.constant 0.000000e+00 : f32
    %29 = vector.broadcast %2 : f32 to vector<2x4x4xf32>
    %30 = vector.broadcast %cst_8 : f32 to vector<2x4x4xf32>
    %31 = arith.select %28, %29, %30 : vector<2x4x4xi1>, vector<2x4x4xf32>
    %32 = arith.cmpi eq, %25, %24 : vector<2x4x4xi32>
    %cst_9 = arith.constant 0.000000e+00 : f32
    %33 = vector.broadcast %3 : f32 to vector<2x4x4xf32>
    %34 = vector.broadcast %cst_9 : f32 to vector<2x4x4xf32>
    %35 = arith.select %32, %33, %34 : vector<2x4x4xi1>, vector<2x4x4xf32>
    %36 = arith.addf %31, %35 : vector<2x4x4xf32>
    %c1_i32_10 = arith.constant 1 : i32
    %37 = vector.broadcast %c1_i32_10 : i32 to vector<2x4x4xi32>
    %38 = arith.subi %24, %37 : vector<2x4x4xi32>
    %39 = arith.cmpi eq, %25, %38 : vector<2x4x4xi32>
    %cst_11 = arith.constant 0.000000e+00 : f32
    %40 = vector.broadcast %4 : f32 to vector<2x4x4xf32>
    %41 = vector.broadcast %cst_11 : f32 to vector<2x4x4xf32>
    %42 = arith.select %39, %40, %41 : vector<2x4x4xi1>, vector<2x4x4xf32>
    %43 = arith.addf %36, %42 : vector<2x4x4xf32>
    %44 = vector.broadcast %23 : vector<2x4x1xf32> to vector<2x4x4xf32>
    %45 = arith.mulf %43, %44 : vector<2x4x4xf32>
    %cst_12 = arith.constant dense<0.000000e+00> : vector<2x4xf32>
    %46 = vector.multi_reduction <add>, %45, %cst_12 [1] : vector<2x4x4xf32> to vector<2x4xf32>
    %47 = vector.shape_cast %46 : vector<2x4xf32> to vector<2x1x4xf32>
    %48 = arith.cmpi eq, %25, %24 : vector<2x4x4xi32>
    %cst_13 = arith.constant 0.000000e+00 : f32
    %49 = vector.shape_cast %47 : vector<2x1x4xf32> to vector<2x1x4xf32>
    %50 = vector.broadcast %49 : vector<2x1x4xf32> to vector<2x4x4xf32>
    %51 = vector.broadcast %cst_13 : f32 to vector<2x4x4xf32>
    %52 = arith.select %48, %50, %51 : vector<2x4x4xi1>, vector<2x4x4xf32>
    %cst_14 = arith.constant dense<0.000000e+00> : vector<2x4xf32>
    %53 = vector.multi_reduction <add>, %52, %cst_14 [2] : vector<2x4x4xf32> to vector<2x4xf32>
    %54 = vector.shape_cast %53 : vector<2x4xf32> to vector<2x4x1xf32>
    %55 = arith.negf %54 : vector<2x4x1xf32>
    %56 = math.exp %55 : vector<2x4x1xf32>
    %cst_15 = arith.constant 1.000000e+00 : f32
    %57 = vector.broadcast %cst_15 : f32 to vector<2x4x1xf32>
    %58 = arith.addf %57, %56 : vector<2x4x1xf32>
    %59 = arith.divf %57, %58 : vector<2x4x1xf32>
    %60 = vector.broadcast %59 : vector<2x4x1xf32> to vector<2x4x256xf32>
    %61 = arith.mulf %19, %60 : vector<2x4x256xf32>
    %c0_16 = arith.constant 0 : index
    %c0_17 = arith.constant 0 : index
    %c0_18 = arith.constant 0 : index
    %62 = vector.load %arg3[%c0_16, %c0_17, %c0_18] : memref<2x4x256xf32, #tpu.memory_space<vmem>>, vector<2x4x256xf32>
    tpu.vector_store %arg3[%c0_16, %c0_17, %c0_18], %61 {strides = array<i32>} : memref<2x4x256xf32, #tpu.memory_space<vmem>>, vector<2x4x256xf32>,
    return
  }
  func.func @transform_0(%arg0: i32) -> i32 {
    %c0_i32 = arith.constant 0 : i32
    %c0_i32_0 = arith.constant 0 : i32
    return %c0_i32 : i32
  }
  func.func @transform_1(%arg0: i32) -> (i32, i32, i32) {
    %c0_i32 = arith.constant 0 : i32
    %c0_i32_0 = arith.constant 0 : i32
    %c0_i32_1 = arith.constant 0 : i32
    return %arg0, %c0_i32, %c0_i32_0 : i32, i32, i32
  }
  func.func @transform_2(%arg0: i32) -> (i32, i32, i32) {
    %c0_i32 = arith.constant 0 : i32
    %c0_i32_0 = arith.constant 0 : i32
    %c0_i32_1 = arith.constant 0 : i32
    return %arg0, %c0_i32, %c0_i32_0 : i32, i32, i32
  }
}

</mosaic_0001>

<bundles_post_ra>
// kernel: chgap_pallas.1
= control target key start
LH: loop header
LB: loop body
LE: loop exit
PB: predicated region body
PF: predicated region fallthrough
CT: control target
= control target key end

     0   :  { %7 = vsyncpa [#allocation3], 0  ;;  %s444_s12 = smov [#allocation2]   ;;  %s513_s0 = inlined_call_operand.vmem [shape: f32[4], index: 0, kind: input, shape index: {}]   ;;  %s514_s1 = inlined_call_operand.vmem [shape: f32[2,4,256], index: 1, kind: input, shape index: {}]   ;;  %s515_s2 = inlined_call_operand.vmem [shape: f32[2,4,256], index: 2, kind: output, shape index: {}]  }
   0x1   :  { %s13_s11 = sshll.u32 %s513_s0, 4  ;;  %s14_s11 = int_to_ptr.vmem [resolvable:$true] %s13_s11 }
   0x2   :  { %16 = dma.vmem_to_smem %s14_s11, 16, %s444_s12, [#allocation3]  }
   0x3   :  { %442 = dma.done.wait [#allocation3], 16  }
   0x4   :  { %443 = vsyncadd [#allocation3], 4294967280 }
   0x5   :  { %23 = sfence }
   0x6   :  { %v24_v0 = vld [vmem:[%s514_s1] sm:$0xff]  ;;  %v25_v1 = vld [vmem:[%s514_s1 + $0x8] sm:$0xff]  ;;  %vm132_vm0 = vcmask 27648   ;;  %vm162_vm1 = vcmask 1043456   ;;  %vm158_vm2 = vcmask 31744   ;;  %s26_s0 = sld [smem:[#allocation2]]  ;;  %v296_v62 = vlaneseq }
   0x7   :  { %31 = vst [vmem:[#allocation1] ss:$2 sm:$0xff] %v24_v0  ;;  %v445_v61 = vmov 256.0   ;;  %s396_s1 = sld [smem:[#allocation2 + $0x1]] }
   0x8   :  { %266 = vst [vmem:[#allocation1 + $0x10] ss:$2 sm:$0xff] %v25_v1  ;;  %s397_s17 = sld [smem:[#allocation2 + $0x2]] }
   0x9   :  { %s398_s18 = sld [smem:[#allocation2 + $0x3]] }
   0xc   :  { %v257_v40 = vstv %s26_s0 }
   0xe   :  { %v32_v2 = vld.sshfl [vmem:[#allocation1] sm:$0xff pattern:$0x75316420]  ;;  %v33_v3 = vld.sshfl [vmem:[#allocation1 + $0x8] sm:$0xff pattern:$0x75316420] }
   0xf   :  { %36 = vst [vmem:[#allocation1] ss:$2 sm:$0xff] %v24_v0  ;;  %v267_v51 = vld.sshfl [vmem:[#allocation1 + $0x10] sm:$0xff pattern:$0x75316420] }
  0x10   :  { %v268_v52 = vld.sshfl [vmem:[#allocation1 + $0x18] sm:$0xff pattern:$0x75316420] }
  0x16   :  { %v37_v4 = vld.sshfl [vmem:[#allocation1] sm:$0xff pattern:$0x75316420]  ;;  %v38_v5 = vld.sshfl [vmem:[#allocation1 + $0x8] sm:$0xff pattern:$0x75316420] }
  0x17   :  { %82 = vst [vmem:[#allocation1] ss:$2 sm:$0xff] %v25_v1  ;;  %56 = vmatpush.xpose.msra.mxu0 %v37_v4  ;;  %76 = vmatpush.xpose.msra.mxu1 %v38_v5  ;;  %v302_v5 = vstv %s396_s1 }
  0x1a   :  { %57 = vmatmul.f32.vlgmr.msra.gmra.mxu0 %v32_v2  ;;  %77 = vmatmul.f32.vlgmr.msra.gmra.mxu1 %v33_v3  ;;  %v299_v2 = vand.u32 127, %v296_v62 }
  0x1e   :  { %v83_v6 = vld.sshfl [vmem:[#allocation1] sm:$0xff pattern:$0x75316420]  ;;  %v84_v7 = vld.sshfl [vmem:[#allocation1 + $0x8] sm:$0xff pattern:$0x75316420] }
  0x1f   :  { %87 = vst [vmem:[#allocation1] ss:$2 sm:$0xff] %v25_v1 }
  0x26   :  { %v88_v8 = vld.sshfl [vmem:[#allocation1] sm:$0xff pattern:$0x75316420]  ;;  %v89_v9 = vld.sshfl [vmem:[#allocation1 + $0x8] sm:$0xff pattern:$0x75316420] }
  0x27   :  { %107 = vmatpush.xpose.msra.mxu2 %v88_v8  ;;  %127 = vmatpush.xpose.msra.mxu3 %v89_v9  ;;  %155 = vst [vmem:[#allocation1] ss:$2 sm:$0xff] %v24_v0 }
  0x2a   :  { %108 = vmatmul.f32.vlgmr.msra.gmra.mxu2 %v83_v6  ;;  %128 = vmatmul.f32.vlgmr.msra.gmra.mxu3 %v84_v7  ;;  %v305_v6 = vstv %s397_s17 }
  0x2e   :  { %v156_v10 = vld.sshfl [vmem:[#allocation1] sm:$0xff pattern:$0x75316420]  ;;  %v157_v11 = vld.sshfl [vmem:[#allocation1 + $0x8] sm:$0xff pattern:$0x75316420] }
  0x2f   :  { %207 = vst [vmem:[#allocation1] ss:$2 sm:$0xff] %v25_v1  ;;  %399 = vmatpush.msk.msrb.mxu0 %vm162_vm1, %v156_v10  ;;  %401 = vmatpush.msk.msrb.mxu1 %vm162_vm1, %v157_v11  ;;  %v310_v11 = vstv %s398_s18 }
  0x36   :  { %v208_v30 = vld.sshfl [vmem:[#allocation1] sm:$0xff pattern:$0x75316420]  ;;  %v209_v31 = vld.sshfl [vmem:[#allocation1 + $0x8] sm:$0xff pattern:$0x75316420] }
  0x37   :  { %403 = vmatpush.msk.msrb.mxu2 %vm162_vm1, %v208_v30  ;;  %405 = vmatpush.msk.msrb.mxu3 %vm162_vm1, %v209_v31  ;;  %262 = vst [vmem:[#allocation1] ss:$2 sm:$0xff] %v24_v0  ;;  %v297_v0 = vshrl.u32 %v296_v62, 7 }
  0x39   :  { %v300_v3 = vadd.s32 1, %v297_v0  ;;  %vm304_vm4 = vcmp.eq.s32.totalorder %v299_v2, %v297_v0  ;;  %v407_v7 = vadd.s32 4294967295, %v297_v0 }
  0x3a   :  { %v306_v10 = vsel %vm304_vm4, %v305_v6, 0.0 }
  0x3b   :  { %vm301_vm3 = vcmp.eq.s32.totalorder %v299_v2, %v300_v3  ;;  %vm309_vm5 = vcmp.eq.s32.totalorder %v299_v2, %v407_v7 }
  0x3c   :  { %v303_v9 = vsel %vm301_vm3, %v302_v5, 0.0 }
  0x3e   :  { %v263_v42 = vld.sshfl [vmem:[#allocation1] sm:$0xff pattern:$0x75316420]  ;;  %v264_v44 = vld.sshfl [vmem:[#allocation1 + $0x8] sm:$0xff pattern:$0x75316420] }
  0x97   :  { %v58_v15 = vpop.f32.mrf.mxu0  ;;  %v78_v16 = vpop.f32.mrf.mxu1 }
  0x98   :  { %v79_v18 = vadd.f32 %v78_v16, %v58_v15 }
  0x9a   :  { %v133_v19 = vsel %vm132_vm0, %v79_v18, inf }
  0xad   :  { %v109_v12 = vpop.f32.mrf.mxu2  ;;  %v129_v13 = vpop.f32.mrf.mxu3 }
  0xae   :  { %v130_v14 = vadd.f32 %v129_v13, %v109_v12  ;;  %v307_v13 = vadd.f32 %v306_v10, %v303_v9 }
  0xb0   :  { %v136_v17 = vsel %vm132_vm0, %v130_v14, inf }
  0xb1   :  { %137 = vmin.xlane.f32.xlu0 %v136_v17 }
  0xb9   :  { %134 = vmin.xlane.f32.xlu0 %v133_v19 }
 0x124   :  { %v138_v20 = vpop.xlane.xlu0 %137 }
 0x125   :  { %v140_v21 = vsub.f32 %v138_v20, %v130_v14  ;;  %v311_v14 = vsel %vm309_vm5, %v310_v11, 0.0 }
 0x126   :  { %v312_v16 = vadd.f32 %v311_v14, %v307_v13 }
 0x127   :  { %v143_v22 = vmul.f32 1.442695, %v140_v21 }
 0x129   :  { %412 = vpow2.f32 %v143_v22 }
 0x12c   :  { %v135_v23 = vpop.xlane.xlu0 %134 }
 0x12d   :  { %v139_v24 = vsub.f32 %v135_v23, %v79_v18 }
 0x12f   :  { %v413_v25 = vpop.eup %412  ;;  %v141_v26 = vmul.f32 1.442695, %v139_v24 }
 0x130   :  { %v148_v27 = vsel %vm132_vm0, %v413_v25, 0.0 }
 0x131   :  { %414 = vpow2.f32 %v141_v26  ;;  %149 = vadd.xlane.f32.xlu1 %v148_v27 }
 0x137   :  { %v415_v28 = vpop.eup %414 }
 0x138   :  { %v145_v29 = vsel %vm132_vm0, %v415_v28, 0.0 }
 0x139   :  { %146 = vadd.xlane.f32.xlu1 %v145_v29 }
 0x1a4   :  { %v150_v32 = vpop.xlane.xlu1 %149 }
 0x1a5   :  { %416 = vrcp.f32 %v150_v32 }
 0x1ab   :  { %v417_v33 = vpop.eup %416 }
 0x1ac   :  { %v147_v34 = vpop.xlane.xlu1 %146  ;;  %v154_v35 = vmul.f32 %v417_v33, %v413_v25 }
 0x1ad   :  { %418 = vrcp.f32 %v147_v34 }
 0x1ae   :  { %404 = vmatmul.msk.f32.vlgmr.msrb.gmra.mxu2 %vm158_vm2, %v154_v35  ;;  %406 = vmatmul.msk.f32.vlgmr.msrb.gmra.mxu3 %vm158_vm2, %v154_v35  ;;  %420 = vrcp.f32 %v445_v61 }
 0x1b3   :  { %v419_v36 = vpop.eup %418 }
 0x1b4   :  { %v153_v37 = vmul.f32 %v419_v36, %v415_v28  ;;  %v421_v63 = vpop.eup %420 }
 0x1b5   :  { %v288_v1 = vmul.f32 256.0, %v421_v63  ;;  %vm292_vm6 = vweird.f32 %v421_v63 }
 0x1b6   :  { %400 = vmatmul.msk.f32.vlgmr.msrb.gmra.mxu0 %vm158_vm2, %v153_v37  ;;  %402 = vmatmul.msk.f32.vlgmr.msrb.gmra.mxu1 %vm158_vm2, %v153_v37 }
 0x1b7   :  { %v289_v4 = vsub.f32 1.0, %v288_v1 }
 0x1b9   :  { %v290_v8 = vmul.f32 %v421_v63, %v289_v4 }
 0x1bb   :  { %v291_v12 = vadd.f32 %v421_v63, %v290_v8 }
 0x1bd   :  { %v293_v15 = vsel %vm292_vm6, %v421_v63, %v291_v12 }
 0x231   :  { %v234_v38 = vpop.f32.mrf.mxu2  ;;  %v254_v39 = vpop.f32.mrf.mxu3 }
 0x232   :  { %v260_v47 = vmul.f32 %v257_v40, %v234_v38  ;;  %v261_v48 = vmul.f32 %v257_v40, %v254_v39 }
 0x233   :  { %v184_v41 = vpop.f32.mrf.mxu0  ;;  %v204_v43 = vpop.f32.mrf.mxu1 }
 0x234   :  { %v258_v45 = vmul.f32 %v257_v40, %v184_v41  ;;  %v259_v46 = vmul.f32 %v257_v40, %v204_v43  ;;  %v486_v56 = vadd.f32 %v267_v51, %v260_v47  ;;  %v488_v57 = vadd.f32 %v268_v52, %v261_v48 }
 0x236   :  { %v478_v49 = vadd.f32 %v263_v42, %v258_v45  ;;  %v480_v50 = vadd.f32 %v264_v44, %v259_v46  ;;  %v282_v58 = vsel %vm162_vm1, %v486_v56, 0.0  ;;  %v283_v59 = vsel %vm162_vm1, %v488_v57, 0.0 }
 0x237   :  { %v284_v60 = vadd.f32 %v283_v59, %v282_v58 }
 0x238   :  { %v277_v53 = vsel %vm162_vm1, %v478_v49, 0.0  ;;  %v278_v54 = vsel %vm162_vm1, %v480_v50, 0.0 }
 0x239   :  { %v279_v55 = vadd.f32 %v278_v54, %v277_v53 }
 0x23b   :  { %280 = vadd.xlane.f32.xlu2 %v279_v55 }
 0x243   :  { %285 = vadd.xlane.f32.xlu2 %v284_v60 }
 0x2ae   :  { %v281_v17 = vpop.xlane.xlu2 %280 }
 0x2af   :  { %v294_v18 = vmul.f32 %v293_v15, %v281_v17 }
 0x2b1   :  { %v313_v19 = vmul.f32 %v312_v16, %v294_v18 }
 0x2b3   :  { %v315_v20 = vsel %vm132_vm0, %v313_v19, 0.0 }
 0x2b4   :  { %v316_v21 = vrot.slane %v315_v20, 4 }
 0x2b6   :  { %v317_v22 = vadd.f32 %v316_v21, %v315_v20  ;;  %v286_v23 = vpop.xlane.xlu2 %285 }
 0x2b7   :  { %v295_v24 = vmul.f32 %v293_v15, %v286_v23 }
 0x2b8   :  { %v318_v25 = vrot.slane %v317_v22, 2 }
 0x2b9   :  { %v314_v26 = vmul.f32 %v312_v16, %v295_v24 }
 0x2ba   :  { %v319_v27 = vadd.f32 %v318_v25, %v317_v22 }
 0x2bb   :  { %v322_v28 = vsel %vm132_vm0, %v314_v26, 0.0 }
 0x2bc   :  { %v323_v29 = vrot.slane %v322_v28, 4  ;;  %v320_v30 = vrot.slane %v319_v27, 1 }
 0x2be   :  { %v324_v31 = vadd.f32 %v323_v29, %v322_v28  ;;  %v321_v32 = vadd.f32 %v320_v30, %v319_v27 }
 0x2c0   :  { %v329_v33 = vsel %vm304_vm4, %v321_v32, 0.0  ;;  %v325_v34 = vrot.slane %v324_v31, 2 }
 0x2c1   :  { %v331_v35 = vsel %vm132_vm0, %v329_v33, 0.0 }
 0x2c2   :  { %332 = vadd.xlane.f32.xlu0 %v331_v35  ;;  %v326_v36 = vadd.f32 %v325_v34, %v324_v31 }
 0x2c4   :  { %v327_v37 = vrot.slane %v326_v36, 1 }
 0x2c6   :  { %v328_v38 = vadd.f32 %v327_v37, %v326_v36 }
 0x2c8   :  { %v330_v39 = vsel %vm304_vm4, %v328_v38, 0.0 }
 0x2c9   :  { %v334_v40 = vsel %vm132_vm0, %v330_v39, 0.0 }
 0x2ca   :  { %335 = vadd.xlane.f32.xlu1 %v334_v40 }
 0x335   :  { %v333_v41 = vpop.xlane.xlu0 %332 }
 0x336   :  { %v408_v42 = vmul.f32 -1.442695, %v333_v41 }
 0x338   :  { %422 = vpow2.f32 %v408_v42 }
 0x33d   :  { %v336_v43 = vpop.xlane.xlu1 %335 }
 0x33e   :  { %v423_v44 = vpop.eup %422  ;;  %v409_v45 = vmul.f32 -1.442695, %v336_v43 }
 0x33f   :  { %v343_v46 = vadd.f32 1.0, %v423_v44 }
 0x340   :  { %424 = vpow2.f32 %v409_v45 }
 0x341   :  { %426 = vrcp.f32 %v343_v46  ;;  %v356_v54 = vand.u32 2147483648, %v343_v46  ;;  %v354_v58 = vand.u32 2147483647, %v343_v46  ;;  %vm350_vm8 = vweird.f32 %v343_v46 }
 0x343   :  { %v357_v61 = vor.u32 1.1754944e-38, %v356_v54  ;;  %vm355_vm10 = vcmp.eq.f32.partialorder %v354_v58, 8.507059e+37 }
 0x346   :  { %v425_v47 = vpop.eup %424 }
 0x347   :  { %v427_v48 = vpop.eup %426  ;;  %v344_v51 = vadd.f32 1.0, %v425_v47 }
 0x348   :  { %v346_v52 = vmul.f32 %v427_v48, %v343_v46  ;;  %vm351_vm7 = vweird.f32 %v427_v48 }
 0x349   :  { %428 = vrcp.f32 %v344_v51  ;;  %vm352_vm9 = vmor %vm350_vm8, %vm351_vm7  ;;  %v369_v3 = vand.u32 2147483647, %v344_v51  ;;  %v371_v4 = vand.u32 2147483648, %v344_v51  ;;  %vm365_vm12 = vweird.f32 %v344_v51 }
 0x34a   :  { %v347_v53 = vsub.f32 1.0, %v346_v52 }
 0x34b   :  { %v372_v10 = vor.u32 1.1754944e-38, %v371_v4  ;;  %vm370_vm14 = vcmp.eq.f32.partialorder %v369_v3, 8.507059e+37 }
 0x34c   :  { %v348_v55 = vmul.f32 %v427_v48, %v347_v53 }
 0x34e   :  { %v349_v59 = vadd.f32 %v427_v48, %v348_v55 }
 0x34f   :  { %v429_v60 = vpop.eup %428 }
 0x350   :  { %v353_v62 = vsel %vm352_vm9, %v427_v48, %v349_v59  ;;  %v361_v63 = vmul.f32 %v429_v60, %v344_v51  ;;  %vm366_vm11 = vweird.f32 %v429_v60 }
 0x351   :  { %v358_v0 = vsel %vm355_vm10, %v357_v61, %v353_v62  ;;  %vm367_vm13 = vmor %vm365_vm12, %vm366_vm11 }
 0x352   :  { %v376_v1 = vmul.f32 %v358_v0, %v480_v50  ;;  %v362_v2 = vsub.f32 1.0, %v361_v63  ;;  %v375_v5 = vmul.f32 %v358_v0, %v478_v49 }
 0x354   :  { %v383_v6 = vrot.slane %v376_v1, 4  ;;  %v363_v7 = vmul.f32 %v429_v60, %v362_v2 }
 0x356   :  { %v385_v8 = vsel %vm162_vm1, %v375_v5, %v383_v6  ;;  %v364_v9 = vadd.f32 %v429_v60, %v363_v7 }
 0x357   :  { %389 = vst [vmem:[%s515_s2] sm:$0xff] %v385_v8 }
 0x358   :  { %v368_v11 = vsel %vm367_vm13, %v429_v60, %v364_v9 }
 0x359   :  { %v373_v50 = vsel %vm370_vm14, %v372_v10, %v368_v11 }
 0x35a   :  { %v378_v12 = vmul.f32 %v373_v50, %v488_v57  ;;  %v377_v49 = vmul.f32 %v373_v50, %v486_v56 }
 0x35c   :  { %v384_v13 = vrot.slane %v378_v12, 4 }
 0x35e   :  { %v386_v14 = vsel %vm162_vm1, %v377_v49, %v384_v13 }
 0x35f   :  { %390 = vst [vmem:[%s515_s2 + $0x8] sm:$0xff] %v386_v14 }
 0x360   :  { %395 = vsyncpa [#allocation3], 1 }

</bundles_post_ra>
